<compile_context>
chip_gen: v7x
topology: tpu7x:2x2x1
jax: 0.10.0
libtpu: 0.0.40
codegen_flags: <defaults>
</compile_context>

<pallas_src>
import functools

import numpy as np
import jax
import jax.numpy as jnp
from jax.experimental import pallas as pl
from jax.experimental.pallas import tpu as pltpu  # noqa: F401  (TPU backend assumed)

LANE = 128
SUBLANE = 8


def _round_up(v, m):
    return ((v + m - 1) // m) * m


def _apply_act(x, name):
    if name == "relu":
        return jnp.maximum(x, 0.0)
    if name == "leaky":
        return jnp.where(x >= 0, x, 0.01 * x)  # LeakyReLU(negative_slope=0.01)
    return x  # None -> identity


# ----------------------------------------------------------------------------
# Fused Pallas kernel: adjacency build + SAGE stack + pooling + FC head
# ----------------------------------------------------------------------------
def _graphnet_kernel(edge_ref, batch_ref, x_ref, prm_ref, out_ref, *,
                     graph_plan, fc_plan, pooling):
    n_nodes = x_ref.shape[0]
    n_edges = edge_ref.shape[1]
    n_graphs = out_ref.shape[0]

    x = x_ref[...]                                            # (N, F_in)

    # ---- adjacency built in-kernel (VPU compares + one MXU NT contraction) ---
    edges = edge_ref[...]                                     # (2, E) int32 [src; dst]
    node_iota = jax.lax.broadcasted_iota(jnp.int32, (n_nodes, n_edges), 0)
    src_oh = (edges[0:1, :] == node_iota).astype(jnp.float32)  # (N, E)
    dst_oh = (edges[1:2, :] == node_iota).astype(jnp.float32)  # (N, E)
    deg = jnp.sum(dst_oh, axis=1, keepdims=True)               # in-degree (dups counted)
    dst_scaled = dst_oh / jnp.maximum(deg, 1.0)
    # adj_norm[i, j] = (#edges j->i) / max(deg_i, 1); contract the edge axis.
    adj_norm = jax.lax.dot_general(
        dst_scaled, src_oh, (((1,), (1,)), ((), ())),
        preferred_element_type=jnp.float32)                    # (N, N)

    # ---- pooling matrix built in-kernel ---------------------------------------
    graph_iota = jax.lax.broadcasted_iota(jnp.int32, (n_graphs, n_nodes), 0)
    pool = (batch_ref[...] == graph_iota).astype(jnp.float32)  # (B, N)
    if pooling == "mean":
        pool = pool / jnp.maximum(jnp.sum(pool, axis=1, keepdims=True), 1.0)
    # "add": raw one-hot.  TODO(synk): 'max' global pooling not implemented.

    # ---- SAGEConv stack (mean aggregation, fused activation) ------------------
    for entry in graph_plan:
        if entry[0] == "sage":
            _, act, wl_off, wr_off, b_off, d_in, d_out = entry
            w_l = prm_ref[pl.ds(wl_off, d_in), pl.ds(0, d_out)]
            w_r = prm_ref[pl.ds(wr_off, d_in), pl.ds(0, d_out)]
            b = prm_ref[pl.ds(b_off, 1), pl.ds(0, d_out)]
            h_l = jnp.dot(x, w_l, preferred_element_type=jnp.float32)
            h_r = jnp.dot(x, w_r, preferred_element_type=jnp.float32)
            agg = jnp.dot(adj_norm, h_l, preferred_element_type=jnp.float32)
            x = _apply_act(agg + h_r + b, act)
        else:  # standalone activation module
            x = _apply_act(x, entry[1])

    # ---- global pooling fused with the head -----------------------------------
    x = jnp.dot(pool, x, preferred_element_type=jnp.float32)   # (B, d)

    # ---- FC head ---------------------------------------------------------------
    for entry in fc_plan:
        if entry[0] == "linear":
            _, act, w_off, b_off, d_in, d_out = entry
            w = prm_ref[pl.ds(w_off, d_in), pl.ds(0, d_out)]
            b = prm_ref[pl.ds(b_off, 1), pl.ds(0, d_out)]
            x = _apply_act(jnp.dot(x, w, preferred_element_type=jnp.float32) + b, act)
        else:
            x = _apply_act(x, entry[1])

    out_ref[...] = x                     # only the tiny (B, n_labels) leaves VMEM


# ----------------------------------------------------------------------------
# Parameter init (mirrors the torch _setup_layers construction)
# ----------------------------------------------------------------------------
CONFIG = {
    "n_features": 8,
    "n_labels": 4,
    "graph_layers": [32, "relu", 32, "relu"],
    "fc_layers": [16, "relu", 8],
    "pooling": "mean",
}


def init_params(key, config):
    params = {"sage": [], "fc": []}
    dims = []
    for layer in config["graph_layers"]:
        if isinstance(layer, int):
            d_in = dims[-1] if dims else config["n_features"]
            key, k1, k2, k3 = jax.random.split(key, 4)
            params["sage"].append({
                "w_l": 0.1 * jax.random.normal(k1, (d_in, layer), jnp.float32),
                "w_r": 0.1 * jax.random.normal(k2, (d_in, layer), jnp.float32),
                "b": 0.1 * jax.random.normal(k3, (1, layer), jnp.float32),
            })
            dims.append(layer)
    fc_cfg = config["fc_layers"]
    for i, layer in enumerate(fc_cfg):
        if isinstance(layer, int):
            if i != 0 and isinstance(fc_cfg[i - 1], int):
                continue  # reference _setup_layers emits a ReLU here, not a Linear
            d_in = dims[-1] if dims else config["n_features"]
            key, k1, k2 = jax.random.split(key, 3)
            params["fc"].append({
                "w": 0.1 * jax.random.normal(k1, (d_in, layer), jnp.float32),
                "b": 0.1 * jax.random.normal(k2, (1, layer), jnp.float32),
            })
            dims.append(layer)
    key, k1, k2 = jax.random.split(key, 3)
    params["fc"].append({
        "w": 0.1 * jax.random.normal(k1, (dims[-1], config["n_labels"]), jnp.float32),
        "b": 0.1 * jax.random.normal(k2, (1, config["n_labels"]), jnp.float32),
    })
    return params


# ----------------------------------------------------------------------------
# Pack every weight/bias into ONE lane-dense (R, 128) slab + static slice plans
# ----------------------------------------------------------------------------
def pack_params(params, config):
    entries = []            # (np_array, row_offset)
    row = 0
    slab_width = LANE

    def push(arr, rows_slice, cols_slice):
        nonlocal row, slab_width
        arr = np.asarray(arr, np.float32)
        block_rows = _round_up(max(rows_slice, arr.shape[0]), SUBLANE)
        slab_width = max(slab_width, cols_slice, arr.shape[1])
        off = row
        entries.append((arr, off))
        row += block_rows
        return off

    def pad_feat(d):        # hidden feature dims -> lane-dense multiples of 128
        return _round_up(d, LANE)

    # --- graph (SAGE) layers, mirroring the reference module list -------------
    modules = []
    for layer in config["graph_layers"]:
        if isinstance(layer, int):
            modules.append(("sage", layer))
        elif isinstance(layer, str) and layer in ("relu", "leaky"):
            modules.append(("act", layer))
    graph_plan = []
    d_in_pad = config["n_features"]     # raw input feature width (not padded)
    si, i = 0, 0
    while i < len(modules):
        kind, val = modules[i]
        if kind == "sage":
            act = None
            if i + 1 < len(modules) and modules[i + 1][0] == "act":
                act = modules[i + 1][1]
                i += 2
            else:
                i += 1
            p = params["sage"][si]; si += 1
            d_out_pad = pad_feat(val)
            wl_off = push(p["w_l"], d_in_pad, d_out_pad)
            wr_off = push(p["w_r"], d_in_pad, d_out_pad)
            b_off = push(p["b"], 1, d_out_pad)
            graph_plan.append(("sage", act, wl_off, wr_off, b_off,
                               d_in_pad, d_out_pad))
            d_in_pad = d_out_pad
        else:
            graph_plan.append(("act", val))
            i += 1

    # --- FC layers, mirroring the reference (incl. adjacent-int -> ReLU) -------
    fc_cfg = config["fc_layers"]
    fc_modules = []
    for k, layer in enumerate(fc_cfg):
        if isinstance(layer, int):
            if k != 0 and isinstance(fc_cfg[k - 1], int):
                fc_modules.append(("act", "relu"))   # reference emits ReLU, not Linear
            else:
                fc_modules.append(("linear", layer))
        elif isinstance(layer, str) and layer in ("relu", "leaky"):
            fc_modules.append(("act", layer))
        # 'drop' -> Dropout -> identity at inference
    fc_modules.append(("linear", config["n_labels"]))    # final projection

    fc_plan = []
    fi, j = 0, 0
    n_fc_params = len(params["fc"])
    while j < len(fc_modules):
        kind, val = fc_modules[j]
        if kind == "linear":
            act = None
            if j + 1 < len(fc_modules) and fc_modules[j + 1][0] == "act":
                act = fc_modules[j + 1][1]
                j += 2
            else:
                j += 1
            p = params["fc"][fi]; fi += 1
            is_final = (fi == n_fc_params)
            d_out_pad = val if is_final else pad_feat(val)   # keep n_labels exact
            w_off = push(p["w"], d_in_pad, d_out_pad)
            b_off = push(p["b"], 1, d_out_pad)
            fc_plan.append(("linear", act, w_off, b_off, d_in_pad, d_out_pad))
            d_in_pad = d_out_pad
        else:
            fc_plan.append(("act", val))
            j += 1

    slab = np.zeros((row, slab_width), np.float32)
    for arr, off in entries:
        slab[off:off + arr.shape[0], :arr.shape[1]] = arr
    return jnp.asarray(slab), tuple(graph_plan), tuple(fc_plan)


# ----------------------------------------------------------------------------
# Forward wrapper: a single pallas_call, no grid, 4 inputs + 1 output
# ----------------------------------------------------------------------------
def graphnet_forward(slab, graph_plan, fc_plan, x, edge_index, edge_attr, batch,
                     num_graphs, config):
    # TODO(synk): edge_attr matches the reference forward signature but is
    # unused — PyG SAGEConv does not consume edge weights.
    del edge_attr
    if config["pooling"] not in ("mean", "add"):
        # TODO(synk): 'max' global pooling not implemented in the fused kernel.
        raise NotImplementedError("only mean/add pooling implemented")

    n = x.shape[0]
    out_shape = (num_graphs, config["n_labels"])
    kernel = functools.partial(_graphnet_kernel, graph_plan=graph_plan,
                               fc_plan=fc_plan, pooling=config["pooling"])
    out = pl.pallas_call(
        kernel,
        out_shape=jax.ShapeDtypeStruct(out_shape, jnp.float32),
    )(edge_index.astype(jnp.int32),
      batch.reshape(1, n).astype(jnp.int32),
      x.astype(jnp.float32),
      slab)
    return out.reshape(-1)     # matches x.view(-1)


# ----------------------------------------------------------------------------
# Example run
# ----------------------------------------------------------------------------
if __name__ == "__main__":
    key = jax.random.PRNGKey(0)
    k_param, k_x, k_e0, k_e1, k_w = jax.random.split(key, 5)

    params = init_params(k_param, CONFIG)
    slab, graph_plan, fc_plan = pack_params(params, CONFIG)

    num_nodes = 16
    num_graphs = 2
    n_feat = CONFIG["n_features"]

    # node features [N, F]
    x = jax.random.normal(k_x, (num_nodes, n_feat), jnp.float32)

    # 20 random edges inside each of the two graphs (nodes 0-7 and 8-15)
    e0 = jax.random.randint(k_e0, (2, 20), 0, 8)
    e1 = jax.random.randint(k_e1, (2, 20), 8, 16)
    edge_index = jnp.concatenate([e0, e1], axis=1)            # [2, 40]
    edge_attr = jax.random.uniform(k_w, (edge_index.shape[1],), jnp.float32)

    # node -> graph assignment
    batch = jnp.concatenate([jnp.zeros(8, jnp.int32), jnp.ones(8, jnp.int32)])

    # One compiled callable, reused across calls (per-call overhead dwarfs the
    # ~10 kFLOP of compute at this size).
    fwd = jax.jit(lambda s, xv, ei, bv: graphnet_forward(
        s, graph_plan, fc_plan, xv, ei, edge_attr, bv, num_graphs, CONFIG))

    out = fwd(slab, x, edge_index, batch)
    out = jax.block_until_ready(out)
    assert out.shape == (num_graphs * CONFIG["n_labels"],)
    print("KERNEL_OK")
</pallas_src>

<mosaic_0001>
module attributes {stable_mosaic.version = 11 : i64} {
  func.func @_graphnet_kernel(%arg0: memref<2x40xi32, #tpu.memory_space<vmem>>, %arg1: memref<1x16xi32, #tpu.memory_space<vmem>>, %arg2: memref<16x8xf32, #tpu.memory_space<vmem>>, %arg3: memref<696x128xf32, #tpu.memory_space<vmem>>, %arg4: memref<2x4xf32, #tpu.memory_space<vmem>>) attributes {dimension_semantics = [], scalar_prefetch = 0 : i64, scratch_operands = 0 : i64, tpu.core_type = #tpu.core_type<tc>} {
    %c0 = arith.constant 0 : index
    %c0_0 = arith.constant 0 : index
    %0 = vector.load %arg2[%c0, %c0_0] : memref<16x8xf32, #tpu.memory_space<vmem>>, vector<16x8xf32>
    %c0_1 = arith.constant 0 : index
    %c0_2 = arith.constant 0 : index
    %1 = vector.load %arg0[%c0_1, %c0_2] : memref<2x40xi32, #tpu.memory_space<vmem>>, vector<2x40xi32>
    %2 = tpu.iota {dimensions = array<i32: 0>} : vector<16x40xi32>
    %3 = vector.extract_strided_slice %1 {offsets = [0, 0], sizes = [1, 40], strides = [1, 1]} : vector<2x40xi32> to vector<1x40xi32>
    %4 = vector.broadcast %3 : vector<1x40xi32> to vector<16x40xi32>
    %5 = arith.cmpi eq, %4, %2 : vector<16x40xi32>
    %6 = arith.extui %5 : vector<16x40xi1> to vector<16x40xi32>
    %7 = arith.sitofp %6 : vector<16x40xi32> to vector<16x40xf32>
    %8 = vector.extract_strided_slice %1 {offsets = [1, 0], sizes = [1, 40], strides = [1, 1]} : vector<2x40xi32> to vector<1x40xi32>
    %9 = vector.broadcast %8 : vector<1x40xi32> to vector<16x40xi32>
    %10 = arith.cmpi eq, %9, %2 : vector<16x40xi32>
    %11 = arith.extui %10 : vector<16x40xi1> to vector<16x40xi32>
    %12 = arith.sitofp %11 : vector<16x40xi32> to vector<16x40xf32>
    %cst = arith.constant dense<0.000000e+00> : vector<16xf32>
    %13 = vector.multi_reduction <add>, %12, %cst [1] : vector<16x40xf32> to vector<16xf32>
    %14 = vector.shape_cast %13 : vector<16xf32> to vector<16x1xf32>
    %cst_3 = arith.constant 1.000000e+00 : f32
    %15 = vector.broadcast %cst_3 : f32 to vector<16x1xf32>
    %16 = arith.maximumf %14, %15 : vector<16x1xf32>
    %17 = vector.broadcast %16 : vector<16x1xf32> to vector<16x40xf32>
    %18 = arith.divf %12, %17 : vector<16x40xf32>
    %cst_4 = arith.constant dense<0.000000e+00> : vector<16x16xf32>
    %19 = tpu.matmul %18, %7, %cst_4 {dimension_numbers = #tpu.dot_dimension_numbers<[1], [1], [0], [0], [0, 0, 1, 0], [], []>} : vector<16x40xf32>, vector<16x40xf32>, vector<16x16xf32> -> vector<16x16xf32>
    %20 = tpu.iota {dimensions = array<i32: 0>} : vector<2x16xi32>
    %c0_5 = arith.constant 0 : index
    %c0_6 = arith.constant 0 : index
    %21 = vector.load %arg1[%c0_5, %c0_6] : memref<1x16xi32, #tpu.memory_space<vmem>>, vector<1x16xi32>
    %22 = vector.broadcast %21 : vector<1x16xi32> to vector<2x16xi32>
    %23 = arith.cmpi eq, %22, %20 : vector<2x16xi32>
    %24 = arith.extui %23 : vector<2x16xi1> to vector<2x16xi32>
    %25 = arith.sitofp %24 : vector<2x16xi32> to vector<2x16xf32>
    %cst_7 = arith.constant dense<0.000000e+00> : vector<2xf32>
    %26 = vector.multi_reduction <add>, %25, %cst_7 [1] : vector<2x16xf32> to vector<2xf32>
    %27 = vector.shape_cast %26 : vector<2xf32> to vector<2x1xf32>
    %cst_8 = arith.constant 1.000000e+00 : f32
    %28 = vector.broadcast %cst_8 : f32 to vector<2x1xf32>
    %29 = arith.maximumf %27, %28 : vector<2x1xf32>
    %30 = vector.broadcast %29 : vector<2x1xf32> to vector<2x16xf32>
    %31 = arith.divf %25, %30 : vector<2x16xf32>
    %c0_9 = arith.constant 0 : index
    %c0_10 = arith.constant 0 : index
    %32 = vector.load %arg3[%c0_9, %c0_10] : memref<696x128xf32, #tpu.memory_space<vmem>>, vector<8x128xf32>
    %c8 = arith.constant 8 : index
    %c0_11 = arith.constant 0 : index
    %33 = vector.load %arg3[%c8, %c0_11] : memref<696x128xf32, #tpu.memory_space<vmem>>, vector<8x128xf32>
    %c16 = arith.constant 16 : index
    %c0_12 = arith.constant 0 : index
    %34 = vector.load %arg3[%c16, %c0_12] : memref<696x128xf32, #tpu.memory_space<vmem>>, vector<1x128xf32>
    %cst_13 = arith.constant dense<0.000000e+00> : vector<16x128xf32>
    %35 = tpu.matmul %0, %32, %cst_13 {dimension_numbers = #tpu.dot_dimension_numbers<[1], [0], [0], [1], [0, 0, 1, 1], [], []>} : vector<16x8xf32>, vector<8x128xf32>, vector<16x128xf32> -> vector<16x128xf32>
    %cst_14 = arith.constant dense<0.000000e+00> : vector<16x128xf32>
    %36 = tpu.matmul %0, %33, %cst_14 {dimension_numbers = #tpu.dot_dimension_numbers<[1], [0], [0], [1], [0, 0, 1, 1], [], []>} : vector<16x8xf32>, vector<8x128xf32>, vector<16x128xf32> -> vector<16x128xf32>
    %cst_15 = arith.constant dense<0.000000e+00> : vector<16x128xf32>
    %37 = tpu.matmul %19, %35, %cst_15 {dimension_numbers = #tpu.dot_dimension_numbers<[1], [0], [0], [1], [0, 0, 1, 1], [], []>} : vector<16x16xf32>, vector<16x128xf32>, vector<16x128xf32> -> vector<16x128xf32>
    %38 = arith.addf %37, %36 : vector<16x128xf32>
    %39 = vector.broadcast %34 : vector<1x128xf32> to vector<16x128xf32>
    %40 = arith.addf %38, %39 : vector<16x128xf32>
    %cst_16 = arith.constant 0.000000e+00 : f32
    %41 = vector.broadcast %cst_16 : f32 to vector<16x128xf32>
    %42 = arith.maximumf %40, %41 : vector<16x128xf32>
    %c24 = arith.constant 24 : index
    %c0_17 = arith.constant 0 : index
    %43 = vector.load %arg3[%c24, %c0_17] : memref<696x128xf32, #tpu.memory_space<vmem>>, vector<128x128xf32>
    %c152 = arith.constant 152 : index
    %c0_18 = arith.constant 0 : index
    %44 = vector.load %arg3[%c152, %c0_18] : memref<696x128xf32, #tpu.memory_space<vmem>>, vector<128x128xf32>
    %c280 = arith.constant 280 : index
    %c0_19 = arith.constant 0 : index
    %45 = vector.load %arg3[%c280, %c0_19] : memref<696x128xf32, #tpu.memory_space<vmem>>, vector<1x128xf32>
    %cst_20 = arith.constant dense<0.000000e+00> : vector<16x128xf32>
    %46 = tpu.matmul %42, %43, %cst_20 {dimension_numbers = #tpu.dot_dimension_numbers<[1], [0], [0], [1], [0, 0, 1, 1], [], []>} : vector<16x128xf32>, vector<128x128xf32>, vector<16x128xf32> -> vector<16x128xf32>
    %cst_21 = arith.constant dense<0.000000e+00> : vector<16x128xf32>
    %47 = tpu.matmul %42, %44, %cst_21 {dimension_numbers = #tpu.dot_dimension_numbers<[1], [0], [0], [1], [0, 0, 1, 1], [], []>} : vector<16x128xf32>, vector<128x128xf32>, vector<16x128xf32> -> vector<16x128xf32>
    %cst_22 = arith.constant dense<0.000000e+00> : vector<16x128xf32>
    %48 = tpu.matmul %19, %46, %cst_22 {dimension_numbers = #tpu.dot_dimension_numbers<[1], [0], [0], [1], [0, 0, 1, 1], [], []>} : vector<16x16xf32>, vector<16x128xf32>, vector<16x128xf32> -> vector<16x128xf32>
    %49 = arith.addf %48, %47 : vector<16x128xf32>
    %50 = vector.broadcast %45 : vector<1x128xf32> to vector<16x128xf32>
    %51 = arith.addf %49, %50 : vector<16x128xf32>
    %cst_23 = arith.constant 0.000000e+00 : f32
    %52 = vector.broadcast %cst_23 : f32 to vector<16x128xf32>
    %53 = arith.maximumf %51, %52 : vector<16x128xf32>
    %cst_24 = arith.constant dense<0.000000e+00> : vector<2x128xf32>
    %54 = tpu.matmul %31, %53, %cst_24 {dimension_numbers = #tpu.dot_dimension_numbers<[1], [0], [0], [1], [0, 0, 1, 1], [], []>} : vector<2x16xf32>, vector<16x128xf32>, vector<2x128xf32> -> vector<2x128xf32>
    %c288 = arith.constant 288 : index
    %c0_25 = arith.constant 0 : index
    %55 = vector.load %arg3[%c288, %c0_25] : memref<696x128xf32, #tpu.memory_space<vmem>>, vector<128x128xf32>
    %c416 = arith.constant 416 : index
    %c0_26 = arith.constant 0 : index
    %56 = vector.load %arg3[%c416, %c0_26] : memref<696x128xf32, #tpu.memory_space<vmem>>, vector<1x128xf32>
    %cst_27 = arith.constant dense<0.000000e+00> : vector<2x128xf32>
    %57 = tpu.matmul %54, %55, %cst_27 {dimension_numbers = #tpu.dot_dimension_numbers<[1], [0], [0], [1], [0, 0, 1, 1], [], []>} : vector<2x128xf32>, vector<128x128xf32>, vector<2x128xf32> -> vector<2x128xf32>
    %58 = vector.broadcast %56 : vector<1x128xf32> to vector<2x128xf32>
    %59 = arith.addf %57, %58 : vector<2x128xf32>
    %cst_28 = arith.constant 0.000000e+00 : f32
    %60 = vector.broadcast %cst_28 : f32 to vector<2x128xf32>
    %61 = arith.maximumf %59, %60 : vector<2x128xf32>
    %c424 = arith.constant 424 : index
    %c0_29 = arith.constant 0 : index
    %62 = vector.load %arg3[%c424, %c0_29] : memref<696x128xf32, #tpu.memory_space<vmem>>, vector<128x128xf32>
    %c552 = arith.constant 552 : index
    %c0_30 = arith.constant 0 : index
    %63 = vector.load %arg3[%c552, %c0_30] : memref<696x128xf32, #tpu.memory_space<vmem>>, vector<1x128xf32>
    %cst_31 = arith.constant dense<0.000000e+00> : vector<2x128xf32>
    %64 = tpu.matmul %61, %62, %cst_31 {dimension_numbers = #tpu.dot_dimension_numbers<[1], [0], [0], [1], [0, 0, 1, 1], [], []>} : vector<2x128xf32>, vector<128x128xf32>, vector<2x128xf32> -> vector<2x128xf32>
    %65 = vector.broadcast %63 : vector<1x128xf32> to vector<2x128xf32>
    %66 = arith.addf %64, %65 : vector<2x128xf32>
    %c560 = arith.constant 560 : index
    %c0_32 = arith.constant 0 : index
    %67 = vector.load %arg3[%c560, %c0_32] : memref<696x128xf32, #tpu.memory_space<vmem>>, vector<128x4xf32>
    %c688 = arith.constant 688 : index
    %c0_33 = arith.constant 0 : index
    %68 = vector.load %arg3[%c688, %c0_33] : memref<696x128xf32, #tpu.memory_space<vmem>>, vector<1x4xf32>
    %cst_34 = arith.constant dense<0.000000e+00> : vector<2x4xf32>
    %69 = tpu.matmul %66, %67, %cst_34 {dimension_numbers = #tpu.dot_dimension_numbers<[1], [0], [0], [1], [0, 0, 1, 1], [], []>} : vector<2x128xf32>, vector<128x4xf32>, vector<2x4xf32> -> vector<2x4xf32>
    %70 = vector.broadcast %68 : vector<1x4xf32> to vector<2x4xf32>
    %71 = arith.addf %69, %70 : vector<2x4xf32>
    %c0_35 = arith.constant 0 : index
    %c0_36 = arith.constant 0 : index
    %72 = vector.load %arg4[%c0_35, %c0_36] : memref<2x4xf32, #tpu.memory_space<vmem>>, vector<2x4xf32>
    tpu.vector_store %arg4[%c0_35, %c0_36], %71 {strides = array<i32>} : memref<2x4xf32, #tpu.memory_space<vmem>>, vector<2x4xf32>,
    return
  }
}

</mosaic_0001>

<bundles_post_ra>
// kernel: _lambda_.1
= control target key start
LH: loop header
LB: loop body
LE: loop exit
PB: predicated region body
PF: predicated region fallthrough
CT: control target
= control target key end

     0   :  { %9 = vsyncpa [#allocation3], 0  ;;  %s1580_s15 = smov [#allocation2]   ;;  %s1707_s0 = inlined_call_operand.vmem [shape: s32[2,40], index: 0, kind: input, shape index: {}]   ;;  %s1708_s1 = inlined_call_operand.vmem [shape: s32[1,16], index: 1, kind: input, shape index: {}]   ;;  %s1709_s2 = inlined_call_operand.vmem [shape: f32[16,8], index: 2, kind: input, shape index: {}]   ;;  %s1710_s3 = inlined_call_operand.hbm [shape: f32[696,128], index: 3, kind: input, shape index: {}]   ;;  %s1711_s4 = inlined_call_operand.vmem [shape: f32[2,4], index: 4, kind: output, shape index: {}]  }
   0x1   :  { %s21_s16 = sshll.u32 %s1580_s15, 4  ;;  %s1556_s19 = scalar_lea.hbm %s1710_s3, 11136  ;;  %s22_s16 = int_to_ptr.vmem [resolvable:$true] %s21_s16 }
   0x2   :  { %p1557_p0 = scmp.ne.s32.totalorder %s1710_s3, %s1556_s19  ;;  %p1560_p1 = scmp.lt.u32.totalorder %s1556_s19, %s1710_s3 }
   0x4   :  { %p1562_p2 = pnand %p1560_p1, %p1557_p0 }
   0x6   :  { %1565 = shalt.err (!%p1562_p2)
}
   0x7   :  { %s1566_s24 = scalar_lea.vmem %s22_s16, 11136  ;;  %p1571_p4 = scmp.lt.s32.totalorder %s22_s16, %s22_s16 }
   0x8   :  { %p1567_p3 = scmp.ne.s32.totalorder %s22_s16, %s1566_s24  ;;  %p1572_p5 = scmp.lt.s32.totalorder %s1566_s24, %s1566_s24 }
   0xa   :  { %p1573_p6 = por %p1572_p5, %p1571_p4 }
   0xc   :  { %p1574_p7 = pnand %p1573_p6, %p1567_p3 }
   0xe   :  { %1577 = shalt.err (!%p1574_p7)
}
   0xf   :  { %s1581_s25 = smov 128   ;;  %s1582_s26 = smov 8  }
  0x10   :  { %27 = dma.hbm_to_vmem [thread:$0]  %s1710_s3, 11136, %s22_s16, [#allocation3], %s1581_s25, %s1581_s25, %s1582_s26  }
  0x11   :  { %1578 = dma.done.wait [#allocation3], 11136  }
  0x12   :  { %1579 = vsyncadd [#allocation3], 4294956160  ;;  %v34_v0 = vlaneseq  ;;  %v33_v4 = vld [vmem:[%s1707_s0] sm:$0x3]  ;;  %vm57_vm0 = vcmask 326656   ;;  %v1583_v6 = vmov 0.0  }
  0x13   :  { %vm1388_vm5 = vmpackc.low %vm57_vm0, %vm57_vm0  ;;  %v172_v16 = vld [vmem:[#allocation2] sm:$0xff]  ;;  %vm175_vm6 = vcmask 64512   ;;  %v173_v26 = vld [vmem:[#allocation2 + $0x8] sm:$0xff]  ;;  %vm332_vm7 = vcmask 130048   ;;  %vm165_vm8 = vcmask 123904   ;;  %vm1585_vm10 = vmmov 0  }
  0x14   :  { %v1623_v1 = vshrl.u32 %v34_v0, 7  ;;  %v31_v25 = vld [vmem:[%s1709_s2] sm:$0xff]  ;;  %v32_v27 = vld [vmem:[%s1709_s2 + $0x8] sm:$0xff]  ;;  %v422_v28 = vld [vmem:[#allocation2 + $0x18] sm:$0xff]  ;;  %vm1035_vm11 = vcmask 25600  }
  0x15   :  { %v423_v29 = vld [vmem:[#allocation2 + $0x20] sm:$0xff]  ;;  %v424_v31 = vld [vmem:[#allocation2 + $0x28] sm:$0xff]  ;;  %v425_v32 = vld [vmem:[#allocation2 + $0x30] sm:$0xff] }
  0x16   :  { %v49_v2 = vsub.s32 1, %v1623_v1  ;;  %v36_v3 = vadd.s32 8, %v1623_v1  ;;  %v39_v11 = vsub.s32 0, %v1623_v1  ;;  %v1397_v30 = vpack.c.bf16 %v423_v29, %v422_v28  ;;  %v426_v34 = vld [vmem:[#allocation2 + $0x38] sm:$0xff]  ;;  %v427_v35 = vld [vmem:[#allocation2 + $0x40] sm:$0xff]  ;;  %v428_v37 = vld [vmem:[#allocation2 + $0x48] sm:$0xff] }
  0x17   :  { %v1401_v33 = vpack.c.bf16 %v425_v32, %v424_v31  ;;  %v1405_v36 = vpack.c.bf16 %v427_v35, %v426_v34  ;;  %v429_v38 = vld [vmem:[#allocation2 + $0x50] sm:$0xff]  ;;  %v430_v40 = vld [vmem:[#allocation2 + $0x58] sm:$0xff]  ;;  %v431_v41 = vld [vmem:[#allocation2 + $0x60] sm:$0xff]  ;;  %v1584_v32 = vmov 0.0|0.0  }
  0x18   :  { %v50_v5 = vrot.slane %v33_v4, %v49_v2  ;;  %v40_v12 = vrot.slane %v33_v4, %v39_v11  ;;  %1398 = vmatprep.subr.bf16.mxu0 %v1397_v30  ;;  %v1409_v39 = vpack.c.bf16 %v429_v38, %v428_v37  ;;  %v1413_v42 = vpack.c.bf16 %v431_v41, %v430_v40  ;;  %v432_v43 = vld [vmem:[#allocation2 + $0x68] sm:$0xff]  ;;  %v433_v44 = vld [vmem:[#allocation2 + $0x70] sm:$0xff]  ;;  %v434_v46 = vld [vmem:[#allocation2 + $0x78] sm:$0xff] }
  0x19   :  { %1400 = vmatpush3.bf16.msra.mxu0 %v1397_v30  ;;  %v1417_v45 = vpack.c.bf16 %v433_v44, %v432_v43  ;;  %v435_v47 = vld [vmem:[#allocation2 + $0x80] sm:$0xff]  ;;  %v438_v51 = vld [vmem:[#allocation2 + $0x98] sm:$0xff]  ;;  %v440_v57 = vld [vmem:[#allocation2 + $0xa8] sm:$0xff] }
  0x1a   :  { %vm51_vm1 = vcmp.eq.s32.totalorder %v50_v5, %v1623_v1  ;;  %vm52_vm2 = vcmp.eq.s32.totalorder %v50_v5, %v36_v3  ;;  %vm41_vm3 = vcmp.eq.s32.totalorder %v40_v12, %v1623_v1  ;;  %vm42_vm4 = vcmp.eq.s32.totalorder %v40_v12, %v36_v3  ;;  %1402 = vmatprep.subr.bf16.mxu0 %v1401_v33  ;;  %v439_v52 = vld [vmem:[#allocation2 + $0xa0] sm:$0xff]  ;;  %v441_v58 = vld [vmem:[#allocation2 + $0xb0] sm:$0xff]  ;;  %v442_v60 = vld [vmem:[#allocation2 + $0xb8] sm:$0xff] }
  0x1b   :  { %v1044_v7 = vsel %vm51_vm1, 1.0, %v1583_v6  ;;  %v1045_v8 = vsel %vm52_vm2, 1.0, %v1583_v6  ;;  %v1042_v13 = vsel %vm41_vm3, 1.0, %v1583_v6  ;;  %v1043_v14 = vsel %vm42_vm4, 1.0, %v1583_v6  ;;  %v443_v61 = vld [vmem:[#allocation2 + $0xc0] sm:$0xff]  ;;  %v444_v63 = vld [vmem:[#allocation2 + $0xc8] sm:$0xff] }
  0x1c   :  { %v58_v9 = vsel %vm57_vm0, %v1044_v7, 0.0  ;;  %v61_v10 = vsel %vm57_vm0, %v1045_v8, 0.0  ;;  %v1387_v15 = vpack.c.bf16 %v1043_v14, %v1042_v13  ;;  %v1421_v48 = vpack.c.bf16 %v435_v47, %v434_v46  ;;  %v445_v0 = vld [vmem:[#allocation2 + $0xd0] sm:$0xff]  ;;  %v446_v3 = vld [vmem:[#allocation2 + $0xd8] sm:$0xff]  ;;  %v447_v4 = vld [vmem:[#allocation2 + $0xe0] sm:$0xff] }
  0x1d   :  { %59 = vadd.xlane.f32.xlu0 %v58_v9  ;;  %1404 = vmatpush3.bf16.msra.mxu0 %v1401_v33  ;;  %v1429_v56 = vpack.c.bf16 %v439_v52, %v438_v51  ;;  %v1433_v59 = vpack.c.bf16 %v441_v58, %v440_v57  ;;  %v1437_v62 = vpack.c.bf16 %v443_v61, %v442_v60  ;;  %v451_v11 = vld [vmem:[#allocation2 + $0x100] sm:$0xff]  ;;  %v436_v13 = vld [vmem:[#allocation2 + $0x88] sm:$0xff]  ;;  %v437_v14 = vld [vmem:[#allocation2 + $0x90] sm:$0xff] }
  0x1e   :  { %1389 = vmatprep.subr.msk.bf16.mxu1 %vm1388_vm5, %v1387_v15  ;;  %1406 = vmatprep.subr.bf16.mxu0 %v1405_v36  ;;  %v1441_v2 = vpack.c.bf16 %v445_v0, %v444_v63  ;;  %v1445_v5 = vpack.c.bf16 %v447_v4, %v446_v3  ;;  %v762_v33 = vld [vmem:[#allocation2 + $0x128] sm:$0xff]  ;;  %v763_v34 = vld [vmem:[#allocation2 + $0x130] sm:$0xff]  ;;  %v765_v38 = vld [vmem:[#allocation2 + $0x140] sm:$0xff] }
  0x1f   :  { %1392 = vmatpush3.bf16.xpose.msk.msra.mxu1 %vm1388_vm5, %v1387_v15  ;;  %v452_v15 = vld [vmem:[#allocation2 + $0x108] sm:$0xff]  ;;  %v767_v41 = vld [vmem:[#allocation2 + $0x150] sm:$0xff]  ;;  %v769_v44 = vld [vmem:[#allocation2 + $0x160] sm:$0xff] }
  0x20   :  { %1181 = vmatprep.subr.mxu1 %v172_v16  ;;  %v771_v47 = vld [vmem:[#allocation2 + $0x170] sm:$0xff]  ;;  %v774_v51 = vld [vmem:[#allocation2 + $0x188] sm:$0xff]  ;;  %v1061_v58 = vld [vmem:[#allocation2 + $0x118] ss:$0 sm:$0xff] }
  0x21   :  { %62 = vadd.xlane.f32.xlu0 %v61_v10  ;;  %1408 = vmatpush3.bf16.msra.mxu0 %v1405_v36  ;;  %v450_v10 = vld [vmem:[#allocation2 + $0xf8] sm:$0xff] }
  0x22   :  { %1410 = vmatprep.subr.bf16.mxu0 %v1409_v39  ;;  %v1453_v12 = vpack.c.bf16 %v451_v11, %v450_v10  ;;  %v764_v36 = vld [vmem:[#allocation2 + $0x138] sm:$0xff]  ;;  %v856_v10 = vld [vmem:[#allocation2 + $0x1c0] sm:$0xff] }
  0x23   :  { %v1472_v37 = vpack.c.bf16 %v764_v36, %v763_v34  ;;  %v946_v34 = vld [vmem:[#allocation2 + $0x240] sm:$0xff]  ;;  %v947_v36 = vld [vmem:[#allocation2 + $0x248] sm:$0xff] }
  0x25   :  { %1412 = vmatpush3.bf16.msra.mxu0 %v1409_v39  ;;  %v766_v39 = vld [vmem:[#allocation2 + $0x148] sm:$0xff] }
  0x26   :  { %1414 = vmatprep.subr.bf16.mxu0 %v1413_v42  ;;  %v1475_v40 = vpack.c.bf16 %v766_v39, %v765_v38  ;;  %v948_v38 = vld [vmem:[#allocation2 + $0x250] sm:$0xff]  ;;  %v949_v39 = vld [vmem:[#allocation2 + $0x258] sm:$0xff] }
  0x29   :  { %1416 = vmatpush3.bf16.msra.mxu0 %v1413_v42  ;;  %v768_v42 = vld [vmem:[#allocation2 + $0x158] sm:$0xff] }
  0x2a   :  { %1418 = vmatprep.subr.bf16.mxu0 %v1417_v45  ;;  %v1478_v43 = vpack.c.bf16 %v768_v42, %v767_v41  ;;  %v951_v41 = vld [vmem:[#allocation2 + $0x268] sm:$0xff] }
  0x2d   :  { %1420 = vmatpush3.bf16.msra.mxu0 %v1417_v45  ;;  %v770_v45 = vld [vmem:[#allocation2 + $0x168] sm:$0xff] }
  0x2e   :  { %1422 = vmatprep.subr.bf16.mxu0 %v1421_v48  ;;  %v1481_v46 = vpack.c.bf16 %v770_v45, %v769_v44  ;;  %v953_v44 = vld [vmem:[#allocation2 + $0x278] sm:$0xff] }
  0x31   :  { %1424 = vmatpush3.bf16.msra.mxu0 %v1421_v48  ;;  %v772_v48 = vld [vmem:[#allocation2 + $0x178] sm:$0xff] }
  0xaa   :  { %v60_v17 = vpop.xlane.xlu0 %59 }
  0xab   :  { %v64_v18 = vmax.f32 %v60_v17, 1.0  ;;  %v453_v17 = vld [vmem:[#allocation2 + $0x110] sm:$0xff] }
  0xad   :  { %1550 = vrcp.f32 %v64_v18  ;;  %v1457_v18 = vpack.c.bf16 %v453_v17, %v452_v15  ;;  %v859_v15 = vld [vmem:[#allocation2 + $0x1d8] sm:$0xff] }
  0xae   :  { %v63_v19 = vpop.xlane.xlu0 %62 }
  0xaf   :  { %v65_v20 = vmax.f32 %v63_v19, 1.0  ;;  %v1058_v19 = vld [vmem:[#allocation2 + $0x10] ss:$0 sm:$0xff] }
  0xb1   :  { %1552 = vrcp.f32 %v65_v20 }
  0xb7   :  { %v1551_v21 = vpop.eup %1550 }
  0xb8   :  { %v67_v22 = vmul.f32 %v1551_v21, %v1044_v7  ;;  %v448_v7 = vld [vmem:[#allocation2 + $0xe8] sm:$0xff] }
  0xba   :  { %1178 = vmatprep.mubr.msk.f32.mxu1 %vm57_vm0, %v67_v22 }
  0xbb   :  { %v1553_v23 = vpop.eup %1552 }
  0xbc   :  { %v69_v24 = vmul.f32 %v1553_v23, %v1045_v8  ;;  %v449_v8 = vld [vmem:[#allocation2 + $0xf0] sm:$0xff] }
  0xbd   :  { %v1449_v9 = vpack.c.bf16 %v449_v8, %v448_v7  ;;  %v854_v7 = vld [vmem:[#allocation2 + $0x1b0] sm:$0xff]  ;;  %v855_v8 = vld [vmem:[#allocation2 + $0x1b8] sm:$0xff] }
  0xbe   :  { %1179 = vmatmul.mubr.msk.f32.vlgmr.msra.gmra.mrb[0].mxu1 %vm57_vm0, %v69_v24  ;;  %v1496_v11 = vpack.c.bf16 %v856_v10, %v855_v8 }
  0xbf   :  { %1182 = vmatpush3.msra.mxu1 %v172_v16  ;;  %1183 = vmatprep.mubr.msk.f32.mxu1 %vm175_vm6, %v31_v25  ;;  %v1425_v16 = vpack.c.bf16 %v437_v14, %v436_v13  ;;  %v858_v13 = vld [vmem:[#allocation2 + $0x1d0] sm:$0xff] }
  0xc0   :  { %1186 = vmatprep.subr.mxu1 %v173_v26 }
  0xc1   :  { %1426 = vmatprep.subr.bf16.mxu0 %v1425_v16 }
  0xc2   :  { %1184 = vmatmul.mubr.msk.f32.vlgmr.msra.gmra.mrb[2].mxu1 %vm175_vm6, %v32_v27  ;;  %1428 = vmatpush3.bf16.msra.mxu0 %v1425_v16  ;;  %v860_v16 = vld [vmem:[#allocation2 + $0x1e0] sm:$0xff] }
  0xc3   :  { %1187 = vmatpush3.msra.mxu1 %v173_v26  ;;  %1188 = vmatprep.mubr.msk.f32.mxu1 %vm175_vm6, %v31_v25  ;;  %v1050_v26 = vld [vmem:[%s1708_s1] ss:$0 sm:$0xff]  ;;  %v1502_v17 = vpack.c.bf16 %v860_v16, %v859_v15 }
  0xc4   :  { %vm162_vm9 = vcmp.eq.s32.totalorder %v1050_v26, %v1623_v1  ;;  %1468 = vmatprep.subr.bf16.mxu0 %v1584_v32  ;;  %v761_v1 = vld [vmem:[#allocation2 + $0x120] sm:$0xff] }
  0xc5   :  { %v1469_v35 = vpack.c.bf16 %v762_v33, %v761_v1  ;;  %v944_v1 = vld [vmem:[#allocation2 + $0x230] sm:$0xff]  ;;  %v945_v33 = vld [vmem:[#allocation2 + $0x238] sm:$0xff] }
  0xc6   :  { %1189 = vmatmul.mubr.msk.f32.vlgmr.msra.gmra.mrb[4].mxu1 %vm175_vm6, %v32_v27  ;;  %v1664_v27 = vsel %vm162_vm9, 1.0, %v1583_v6 }
  0xc7   :  { %v166_v28 = vsel %vm165_vm8, %v1664_v27, 0.0 }
  0xc8   :  { %167 = vadd.xlane.f32.xlu1 %v166_v28 }
 0x191   :  { %v1649_v49 = vpop.f32.mrb[0].mxu1 }
 0x192   :  { %v1651_v50 = vpop.f32.mrb[1].mxu1 }
 0x193   :  { %1195 = vmatprep.mubr.msk.f32.mxu1 %vm332_vm7, %v1651_v50 }
 0x195   :  { %v1185_v53 = vpop.f32.mrb[2].mxu1 }
 0x196   :  { %v248_v54 = vpop.f32.mrb[3].mxu1 }
 0x197   :  { %v1393_v55 = vpack.c.bf16 %v1185_v53, %v248_v54  ;;  %v775_v53 = vld [vmem:[#allocation2 + $0x190] sm:$0xff]  ;;  %v776_v54 = vld [vmem:[#allocation2 + $0x198] sm:$0xff] }
 0x199   :  { %1394 = vmatprep.subr.bf16.mxu1 %v1393_v55 }
 0x19a   :  { %1396 = vmatpush3.bf16.msra.mxu1 %v1393_v55  ;;  %v1490_v55 = vpack.c.bf16 %v776_v54, %v775_v53 }
 0x19b   :  { %1430 = vmatprep.subr.bf16.mxu1 %v1429_v56 }
 0x19d   :  { %1196 = vmatmul.mubr.msk.f32.vlgmr.msra.gmra.mrb[4].mxu1 %vm332_vm7, %v1649_v49 }
 0x19e   :  { %1432 = vmatpush3.bf16.msra.mxu1 %v1429_v56  ;;  %v168_v56 = vpop.xlane.xlu1 %167 }
 0x19f   :  { %1434 = vmatprep.subr.bf16.mxu1 %v1433_v59  ;;  %v169_v57 = vmax.f32 %v168_v56, 1.0 }
 0x1a1   :  { %1554 = vrcp.f32 %v169_v57  ;;  %v958_v57 = vld [vmem:[#allocation2 + $0x2a0] sm:$0xff] }
 0x1a2   :  { %1436 = vmatpush3.bf16.msra.mxu1 %v1433_v59 }
 0x1a3   :  { %1438 = vmatprep.subr.bf16.mxu1 %v1437_v62 }
 0x1a6   :  { %1440 = vmatpush3.bf16.msra.mxu1 %v1437_v62 }
 0x1a7   :  { %1442 = vmatprep.subr.bf16.mxu1 %v1441_v2 }
 0x1aa   :  { %1444 = vmatpush3.bf16.msra.mxu1 %v1441_v2 }
 0x1ab   :  { %1446 = vmatprep.subr.bf16.mxu1 %v1445_v5  ;;  %v1555_v0 = vpop.eup %1554 }
 0x1ac   :  { %v171_v4 = vmul.f32 %v1555_v0, %v1664_v27  ;;  %v1065_v0 = vld [vmem:[#allocation2 + $0x2b0] ss:$0 sm:$0xff] }
 0x1ae   :  { %1448 = vmatpush3.bf16.msra.mxu1 %v1445_v5  ;;  %v853_v5 = vld [vmem:[#allocation2 + $0x1a8] sm:$0xff] }
 0x1af   :  { %1450 = vmatprep.subr.bf16.mxu1 %v1449_v9 }
 0x1b2   :  { %1452 = vmatpush3.bf16.msra.mxu1 %v1449_v9  ;;  %v1493_v9 = vpack.c.bf16 %v854_v7, %v853_v5 }
 0x1b3   :  { %1454 = vmatprep.subr.bf16.mxu1 %v1453_v12 }
 0x1b6   :  { %1456 = vmatpush3.bf16.msra.mxu1 %v1453_v12  ;;  %v857_v12 = vld [vmem:[#allocation2 + $0x1c8] sm:$0xff] }
 0x1b7   :  { %1458 = vmatprep.subr.bf16.mxu1 %v1457_v18  ;;  %v1499_v14 = vpack.c.bf16 %v858_v13, %v857_v12 }
 0x1ba   :  { %1460 = vmatpush3.bf16.msra.mxu1 %v1457_v18  ;;  %v861_v18 = vld [vmem:[#allocation2 + $0x1e8] sm:$0xff] }
 0x270   :  { %v1197_v20 = vpop.f32.mrb[4].mxu1 }
 0x271   :  { %v419_v21 = vadd.f32 %v1197_v20, %v1058_v19  ;;  %v405_v22 = vpop.f32.mrb[5].mxu1 }
 0x272   :  { %v418_v23 = vadd.f32 %v1058_v19, %v405_v22  ;;  %v862_v19 = vld [vmem:[#allocation2 + $0x1f0] sm:$0xff]  ;;  %v864_v22 = vld [vmem:[#allocation2 + $0x200] sm:$0xff] }
 0x273   :  { %v421_v25 = vmax.f32 %v419_v21, 0.0  ;;  %v1505_v20 = vpack.c.bf16 %v862_v19, %v861_v18  ;;  %v863_v21 = vld [vmem:[#allocation2 + $0x1f8] sm:$0xff] }
 0x274   :  { %v420_v24 = vmax.f32 %v418_v23, 0.0  ;;  %v1508_v23 = vpack.c.bf16 %v864_v22, %v863_v21 }
 0x276   :  { %1230 = vmatprep.mubr.f32.mxu0 %v420_v24  ;;  %1265 = vmatprep.mubr.f32.mxu1 %v420_v24  ;;  %v865_v24 = vld [vmem:[#allocation2 + $0x208] sm:$0xff] }
 0x277   :  { %1231 = vmatmul.mubr.f32.vlgmr.msra.gmra.mrb[0].mxu0 %v421_v25  ;;  %1266 = vmatmul.mubr.f32.vlgmr.msra.gmra.mrb[6].mxu1 %v421_v25  ;;  %v866_v25 = vld [vmem:[#allocation2 + $0x210] sm:$0xff] }
 0x278   :  { %1272 = vmatprep.mubr.msk.f32.mxu1 %vm332_vm7, %v1651_v50  ;;  %1314 = vmatprep.mubr.msk.f32.mxu0 %vm1585_vm10, %v1583_v6  ;;  %v773_v50 = vld [vmem:[#allocation2 + $0x180] sm:$0xff]  ;;  %v1511_v26 = vpack.c.bf16 %v866_v25, %v865_v24 }
 0x279   :  { %1470 = vmatpush3.bf16.msra.mxu0 %v1469_v35  ;;  %v1487_v52 = vpack.c.bf16 %v774_v51, %v773_v50  ;;  %v1517_v35 = vpack.c.bf16 %v945_v33, %v944_v1  ;;  %v957_v50 = vld [vmem:[#allocation2 + $0x298] sm:$0xff] }
 0x27a   :  { %1471 = vmatprep.subr.bf16.mxu0 %v1584_v32 }
 0x27d   :  { %1473 = vmatpush3.bf16.msra.mxu0 %v1472_v37  ;;  %v1520_v37 = vpack.c.bf16 %v947_v36, %v946_v34 }
 0x27e   :  { %1474 = vmatprep.subr.bf16.mxu0 %v1584_v32 }
 0x281   :  { %1476 = vmatpush3.bf16.msra.mxu0 %v1475_v40  ;;  %v1523_v40 = vpack.c.bf16 %v949_v39, %v948_v38 }
 0x282   :  { %1477 = vmatprep.subr.bf16.mxu0 %v1584_v32 }
 0x285   :  { %1479 = vmatpush3.bf16.msra.mxu0 %v1478_v43  ;;  %v952_v43 = vld [vmem:[#allocation2 + $0x270] sm:$0xff] }
 0x286   :  { %1480 = vmatprep.subr.bf16.mxu0 %v1584_v32  ;;  %v1529_v45 = vpack.c.bf16 %v953_v44, %v952_v43 }
 0x289   :  { %1482 = vmatpush3.bf16.msra.mxu0 %v1481_v46  ;;  %v954_v46 = vld [vmem:[#allocation2 + $0x280] sm:$0xff] }
 0x28a   :  { %1483 = vmatprep.subr.bf16.mxu0 %v1584_v32 }
 0x34a   :  { %v1232_v29 = vpop.f32.mrb[0].mxu0 }
 0x34b   :  { %v521_v30 = vpop.f32.mrb[1].mxu0 }
 0x34c   :  { %v1461_v31 = vpack.c.bf16 %v1232_v29, %v521_v30  ;;  %v867_v29 = vld [vmem:[#allocation2 + $0x218] sm:$0xff]  ;;  %v868_v30 = vld [vmem:[#allocation2 + $0x220] sm:$0xff] }
 0x34e   :  { %1462 = vmatprep.subr.bf16.mxu1 %v1461_v31 }
 0x34f   :  { %1464 = vmatpush3.bf16.msra.mxu1 %v1461_v31  ;;  %v1514_v31 = vpack.c.bf16 %v868_v30, %v867_v29 }
 0x350   :  { %1465 = vmatprep.subr.bf16.mxu1 %v1584_v32 }
 0x352   :  { %1273 = vmatmul.mubr.msk.f32.vlgmr.msra.gmra.mrb[6].mxu1 %vm332_vm7, %v1649_v49  ;;  %v1484_v49 = vpack.c.bf16 %v772_v48, %v771_v47  ;;  %v955_v47 = vld [vmem:[#allocation2 + $0x288] sm:$0xff] }
 0x353   :  { %1279 = vmatprep.mubr.msk.f32.mxu1 %vm1585_vm10, %v1583_v6  ;;  %v1532_v48 = vpack.c.bf16 %v955_v47, %v954_v46 }
 0x354   :  { %1485 = vmatpush3.bf16.msra.mxu0 %v1484_v49  ;;  %v956_v49 = vld [vmem:[#allocation2 + $0x290] sm:$0xff] }
 0x355   :  { %1486 = vmatprep.subr.bf16.mxu0 %v1584_v32  ;;  %v1535_v51 = vpack.c.bf16 %v957_v50, %v956_v49 }
 0x358   :  { %1488 = vmatpush3.bf16.msra.mxu0 %v1487_v52  ;;  %v1063_v52 = vld [vmem:[#allocation2 + $0x1a0] ss:$0 sm:$0xff] }
 0x359   :  { %1489 = vmatprep.subr.bf16.mxu0 %v1584_v32 }
 0x35c   :  { %1491 = vmatpush3.bf16.msra.mxu0 %v1490_v55 }
 0x35d   :  { %1516 = vmatprep.subr.bf16.mxu0 %v1584_v32 }
 0x425   :  { %v1274_v59 = vpop.f32.mrb[6].mxu1 }
 0x426   :  { %v685_v60 = vadd.f32 %v1274_v59, %v1061_v58  ;;  %v671_v61 = vpop.f32.mrb[7].mxu1 }
 0x427   :  { %v684_v62 = vadd.f32 %v1061_v58, %v671_v61  ;;  %v959_v58 = vld [vmem:[#allocation2 + $0x2a8] sm:$0xff] }
 0x428   :  { %v687_v63 = vmax.f32 %v685_v60, 0.0  ;;  %v1538_v59 = vpack.c.bf16 %v959_v58, %v958_v57  ;;  %v1064_v60 = vld [vmem:[#allocation2 + $0x228] ss:$0 sm:$0xff] }
 0x429   :  { %v686_v2 = vmax.f32 %v684_v62, 0.0 }
 0x42b   :  { %v1466_v3 = vpack.c.bf16 %v687_v63, %v686_v2 }
 0x42d   :  { %1467 = vmatpush3.bf16.msra.mxu1 %v1466_v3 }
 0x42e   :  { %1492 = vmatprep.subr.bf16.mxu1 %v1584_v32 }
 0x430   :  { %1280 = vmatmul.mubr.msk.f32.vlgmr.msra.gmra.mrb[8].mxu1 %vm332_vm7, %v171_v4 }
 0x431   :  { %1349 = vmatprep.mubr.msk.f32.mxu1 %vm1585_vm10, %v1583_v6  ;;  %1494 = vmatpush3.bf16.msra.mxu1 %v1493_v9 }
 0x432   :  { %1495 = vmatprep.subr.bf16.mxu1 %v1584_v32 }
 0x435   :  { %1497 = vmatpush3.bf16.msra.mxu1 %v1496_v11 }
 0x436   :  { %1498 = vmatprep.subr.bf16.mxu1 %v1584_v32 }
 0x439   :  { %1500 = vmatpush3.bf16.msra.mxu1 %v1499_v14 }
 0x43a   :  { %1501 = vmatprep.subr.bf16.mxu1 %v1584_v32 }
 0x43d   :  { %1503 = vmatpush3.bf16.msra.mxu1 %v1502_v17 }
 0x43e   :  { %1504 = vmatprep.subr.bf16.mxu1 %v1584_v32 }
 0x441   :  { %1506 = vmatpush3.bf16.msra.mxu1 %v1505_v20 }
 0x442   :  { %1507 = vmatprep.subr.bf16.mxu1 %v1584_v32 }
 0x445   :  { %1509 = vmatpush3.bf16.msra.mxu1 %v1508_v23 }
 0x446   :  { %1510 = vmatprep.subr.bf16.mxu1 %v1584_v32 }
 0x449   :  { %1512 = vmatpush3.bf16.msra.mxu1 %v1511_v26 }
 0x44a   :  { %1513 = vmatprep.subr.bf16.mxu1 %v1584_v32 }
 0x44d   :  { %1515 = vmatpush3.bf16.msra.mxu1 %v1514_v31 }
 0x503   :  { %v757_v27 = vpop.f32.mrb[8].mxu1 }
 0x504   :  { %v1281_v28 = vpop.f32.mrb[9].mxu1  ;;  %1315 = vmatmul.mubr.f32.vlgmr.msra.gmra.mrb[2].mxu0 %v757_v27 }
 0x505   :  { %1384 = vmatprep.mubr.msk.f32.mxu0 %vm1585_vm10, %v1583_v6  ;;  %1518 = vmatpush3.bf16.msra.mxu0 %v1517_v35  ;;  %v950_v6 = vld [vmem:[#allocation2 + $0x260] sm:$0xff] }
 0x506   :  { %1519 = vmatprep.subr.bf16.mxu0 %v1584_v32  ;;  %v1526_v42 = vpack.c.bf16 %v951_v41, %v950_v6 }
 0x509   :  { %1521 = vmatpush3.bf16.msra.mxu0 %v1520_v37 }
 0x50a   :  { %1522 = vmatprep.subr.bf16.mxu0 %v1584_v32 }
 0x50d   :  { %1524 = vmatpush3.bf16.msra.mxu0 %v1523_v40 }
 0x50e   :  { %1525 = vmatprep.subr.bf16.mxu0 %v1584_v32 }
 0x511   :  { %1527 = vmatpush3.bf16.msra.mxu0 %v1526_v42 }
 0x512   :  { %1528 = vmatprep.subr.bf16.mxu0 %v1584_v32 }
 0x515   :  { %1530 = vmatpush3.bf16.msra.mxu0 %v1529_v45 }
 0x516   :  { %1531 = vmatprep.subr.bf16.mxu0 %v1584_v32 }
 0x519   :  { %1533 = vmatpush3.bf16.msra.mxu0 %v1532_v48 }
 0x51a   :  { %1534 = vmatprep.subr.bf16.mxu0 %v1584_v32 }
 0x51d   :  { %1536 = vmatpush3.bf16.msra.mxu0 %v1535_v51 }
 0x51e   :  { %1537 = vmatprep.subr.bf16.mxu0 %v1584_v32 }
 0x521   :  { %1539 = vmatpush3.bf16.msra.mxu0 %v1538_v59 }
 0x5d7   :  { %v848_v53 = vpop.f32.mrb[2].mxu0 }
 0x5d8   :  { %v849_v54 = vadd.f32 %v1063_v52, %v848_v53  ;;  %v1316_v55 = vpop.f32.mrb[3].mxu0 }
 0x5da   :  { %v852_v56 = vmax.f32 %v849_v54, 0.0 }
 0x5dc   :  { %1350 = vmatmul.mubr.f32.vlgmr.msra.gmra.mrb[10].mxu1 %v852_v56 }
 0x6af   :  { %v940_v61 = vpop.f32.mrb[10].mxu1 }
 0x6b0   :  { %v941_v62 = vadd.f32 %v1064_v60, %v940_v61  ;;  %v1351_v63 = vpop.f32.mrb[11].mxu1 }
 0x6b2   :  { %1385 = vmatmul.mubr.f32.vlgmr.msra.gmra.mrb[4].mxu0 %v941_v62 }
 0x785   :  { %v1031_v2 = vpop.f32.mrb[4].mxu0 }
 0x786   :  { %v1032_v3 = vadd.f32 %v1065_v0, %v1031_v2  ;;  %v1386_v32 = vpop.f32.mrb[5].mxu0 }
 0x788   :  { %1036 = vst.msk [vmem:[%s1711_s4] sm:$0x3] %vm1035_vm11, %v1032_v3 }
 0x789   :  { %1041 = vsyncpa [#allocation3], 1 }

</bundles_post_ra>
